<compile_context>
chip_gen: v5e
topology: v5e:2x2
jax: 0.10.0
libtpu: 0.0.40
codegen_flags: <defaults>
</compile_context>

<pallas_src>
import functools
import math

import numpy as np
import jax
import jax.numpy as jnp
from jax import lax
from jax.experimental import pallas as pl
from jax.experimental.pallas import tpu as pltpu


_LN10000 = math.log(10000.0)
_SMALL_FALLBACK_BYTES = 256 * 1024        # below this, fused XLA beats pallas_call overhead
_TARGET_BLOCK_BYTES = 2 * 1024 * 1024     # ~2 MiB of x per grid step


def _round_up(v, m):
    return (v + m - 1) // m * m


def _vmem_cap_bytes():
    """Generation-aware VMEM ceiling (v7x has only 64 MiB physical)."""
    cap = 64 * 1024 * 1024                # conservative default
    try:
        cap = int(getattr(pltpu.get_tpu_info(), "vmem_capacity_bytes", cap))
    except Exception:
        pass
    return max(16 * 1024 * 1024, cap - 16 * 1024 * 1024)


def _lane_constants(d_model, d_packed):
    """Per-lane constants for the (possibly packed) layout, shape (1, 1, d_packed).

    Hoisted out of the kernel so iota/exp are not re-run every grid step.
    """
    lane = np.arange(d_packed)
    feat = lane % d_model                               # original feature index
    pair = (feat // 2) * 2                              # 2 * (feat // 2)
    inv_freq = np.exp(pair.astype(np.float64) * (-_LN10000 / d_model)).astype(np.float32)
    phase = ((feat % 2) * (math.pi / 2)).astype(np.float32)   # cos(x) = sin(x + pi/2)
    group = (lane // d_model).astype(np.int32)          # packed sequence sub-row per lane
    shape = (1, 1, d_packed)
    return (jnp.asarray(inv_freq.reshape(shape)),
            jnp.asarray(phase.reshape(shape)),
            jnp.asarray(group.reshape(shape)))


# ----------------------------------------------------------------------------
# Kernels
# ----------------------------------------------------------------------------
def _pe_kernel_seq(inv_ref, phase_ref, group_ref, x_ref, o_ref, *, pack):
    """ind=None path: positions derived from the grid position (no ind DMA)."""
    tsp = x_ref.shape[1]
    row = lax.broadcasted_iota(jnp.int32, (1, tsp, 1), 1)
    base = pl.program_id(0) * tsp                                   # packed-row offset
    pos = ((base + row) * pack + group_ref[...]).astype(jnp.float32)  # (1, tsp, Dp)
    pe = jnp.sin(pos * inv_ref[...] + phase_ref[...])               # one transcendental/elem
    # Add in x's native dtype (bf16 add on v6e/v7x; f32 unchanged), broadcast over batch.
    o_ref[...] = x_ref[...] + pe.astype(o_ref.dtype)


def _pe_kernel_ind(inv_ref, phase_ref, group_ref, ind_ref, x_ref, o_ref, *, pack):
    """ind path: per-(b, s) positions; pack > 1 expands (Bt,tSp,pack) to per-lane."""
    ind = ind_ref[...].astype(jnp.float32)                          # (Bt, tSp, pack)
    if pack == 1:
        pos = ind                                                   # broadcasts over lanes
    else:
        group = group_ref[...]                                      # (1, 1, Dp) int32
        pos = ind[..., 0:1]
        for g in range(1, pack):                                    # small static chain (<= 8)
            pos = jnp.where(group == g, ind[..., g:g + 1], pos)
    pe = jnp.sin(pos * inv_ref[...] + phase_ref[...])
    o_ref[...] = x_ref[...] + pe.astype(o_ref.dtype)


# ----------------------------------------------------------------------------
# Wrapper
# ----------------------------------------------------------------------------
def _positional_encoding_xla(x, ind):
    """Fused pure-XLA path for tiny inputs (pallas_call overhead would dominate)."""
    B, S, D = x.shape
    if ind is None:
        pos = jnp.arange(S, dtype=jnp.float32)[None, :, None]
    else:
        pos = ind.astype(jnp.float32)[..., None]
    feat = jnp.arange(D)
    inv_freq = jnp.exp(((feat // 2) * 2).astype(jnp.float32) * (-_LN10000 / D))
    phase = (feat % 2).astype(jnp.float32) * (math.pi / 2)
    pe = jnp.sin(pos * inv_freq + phase)
    return x + pe.astype(x.dtype)


def positional_encoding(x, ind=None, *, block_rows=None, block_batch=None,
                        force_pallas=False):
    """x: (B, S, D); ind: (B, S) integer positions or None.  Returns x + PE.

    Matches PositionalEncoding.forward in eval() mode.
    TODO(synk): training-mode dropout (nn.Dropout(p=0.1)) is omitted (identity).
    """
    B, S, D = x.shape
    itemsize = x.dtype.itemsize

    # Tiny problems: let XLA fuse the add into neighbours instead.
    if not force_pallas and B * S * D * itemsize < _SMALL_FALLBACK_BYTES:
        return _positional_encoding_xla(x, ind)

    # --- lane packing: make the last (lane) dim a multiple of 128 -------------
    if D % 128 == 0:
        pack = 1
    else:
        pack = 128 // math.gcd(D, 128)
        pack_ok = (S % pack == 0) and (ind is None or pack <= 8)
        if not pack_ok:
            # TODO(synk): D not a multiple of 128 and not cleanly packable ->
            # masked (partial-lane) stores; correct but below peak.
            pack = 1
    d_packed = D * pack
    s_packed = S // pack

    xp = x.reshape(B, s_packed, d_packed)            # layout-preserving (free) reshape
    ind_p = None
    if ind is not None:
        ind_p = ind.astype(jnp.int32).reshape(B, s_packed, pack)

    inv_freq, phase, group = _lane_constants(D, d_packed)

    # --- block sizing: ~2 MiB of x per step; grid never collapses to (1,1) ----
    row_bytes = d_packed * itemsize
    if block_rows is None:
        rows_target = max(8, _TARGET_BLOCK_BYTES // max(1, row_bytes))
        block_rows = s_packed if s_packed <= rows_target else (rows_target // 8) * 8
    block_rows = min(block_rows, s_packed)
    if block_rows < s_packed and block_rows % 8:
        block_rows = max(8, (block_rows // 8) * 8)   # keep the (8, 128) tiling rule

    if block_batch is None:
        if block_rows == s_packed:
            block_batch = max(1, min(B, _TARGET_BLOCK_BYTES // max(1, s_packed * row_bytes)))
        else:
            block_batch = 1
    block_batch = min(block_batch, B)

    # Megacore (v7x): guarantee >= 2 grid steps whenever the problem can be split.
    if pl.cdiv(s_packed, block_rows) * pl.cdiv(B, block_batch) == 1:
        if s_packed >= 16:
            block_rows = max(8, (s_packed // 2 // 8) * 8)
        elif B >= 2:
            block_batch = pl.cdiv(B, 2)

    n_s = pl.cdiv(s_packed, block_rows)
    n_b = pl.cdiv(B, block_batch)
    grid = (n_s, n_b)                                # axis with most steps (seq) first

    # --- explicit VMEM budget --------------------------------------------------
    blk_elems = block_batch * block_rows * d_packed
    io_bytes = 2 * 2 * blk_elems * itemsize                  # x in + out, double-buffered
    tmp_bytes = 4 * blk_elems * 4                            # f32 intermediates (pos/arg/pe)
    ind_bytes = 0
    if ind_p is not None:                                    # lane-padded to 128 in VMEM
        ind_bytes = 2 * block_batch * _round_up(block_rows, 8) * 128 * 4
    const_bytes = 3 * 2 * 8 * _round_up(d_packed, 128) * 4   # (1,1,Dp) lane constants
    need = io_bytes + tmp_bytes + ind_bytes + const_bytes + (2 << 20)
    vmem_limit = int(min(_vmem_cap_bytes(), max(16 * 1024 * 1024, need)))

    # --- pallas_call -------------------------------------------------------------
    const_spec = pl.BlockSpec((1, 1, d_packed), lambda s, b: (0, 0, 0))
    x_spec = pl.BlockSpec((block_batch, block_rows, d_packed), lambda s, b: (b, s, 0))
    out_spec = pl.BlockSpec((block_batch, block_rows, d_packed), lambda s, b: (b, s, 0))

    if ind_p is None:
        kernel = functools.partial(_pe_kernel_seq, pack=pack)
        in_specs = [const_spec, const_spec, const_spec, x_spec]
        args = (inv_freq, phase, group, xp)
    else:
        kernel = functools.partial(_pe_kernel_ind, pack=pack)
        ind_spec = pl.BlockSpec((block_batch, block_rows, pack), lambda s, b: (b, s, 0))
        in_specs = [const_spec, const_spec, const_spec, ind_spec, x_spec]
        args = (inv_freq, phase, group, ind_p, xp)

    # TODO(synk): on v7x, sweep pipeline_mode=pl.Buffered(3) on x_spec if a trace
    # shows exposed DMA at 3.2 TB/s.
    out = pl.pallas_call(
        kernel,
        out_shape=jax.ShapeDtypeStruct((B, s_packed, d_packed), x.dtype),
        grid_spec=pltpu.PrefetchScalarGridSpec(
            num_scalar_prefetch=0,
            grid=grid,
            in_specs=in_specs,
            out_specs=out_spec,
        ),
        compiler_params=pltpu.CompilerParams(
            dimension_semantics=("parallel", "parallel"),
            vmem_limit_bytes=vmem_limit,
        ),
    )(*args)
    return out.reshape(B, S, D)


# ----------------------------------------------------------------------------
# Pure-JAX reference mirroring the PyTorch buffer + gather semantics
# ----------------------------------------------------------------------------
def positional_encoding_ref(x, ind=None, *, max_len=None):
    B, S, D = x.shape
    if max_len is None:
        max_len = S if ind is None else int(jnp.max(ind)) + 1
    position = jnp.arange(max_len, dtype=jnp.float32)[:, None]
    div_term = jnp.exp(jnp.arange(0, D, 2, dtype=jnp.float32) * (-_LN10000 / D))
    pe = jnp.zeros((max_len, D), jnp.float32)
    pe = pe.at[:, 0::2].set(jnp.sin(position * div_term))
    pe = pe.at[:, 1::2].set(jnp.cos(position * div_term))
    added = pe[None, :S, :] if ind is None else pe[ind]
    return (x.astype(jnp.float32) + added).astype(x.dtype)


if __name__ == "__main__":
    key = jax.random.PRNGKey(0)
    ks = jax.random.split(key, 10)

    def check(out, ref, atol):
        assert out.shape == ref.shape and out.dtype == ref.dtype, (out.shape, out.dtype)
        err = float(jnp.max(jnp.abs(jnp.asarray(out, jnp.float32)
                                    - jnp.asarray(ref, jnp.float32))))
        assert err <= atol, err

    # 1) Module-sized shapes (batch=2, seq=8, hidden=32): dispatcher uses the
    #    fused XLA path (below the pallas size threshold).
    B, S, D = 2, 8, 32
    x = jax.random.normal(ks[0], (B, S, D), jnp.float32)
    ind = jax.random.randint(ks[1], (B, S), 0, 64, jnp.int32)
    check(jax.block_until_ready(positional_encoding(x, ind)),
          positional_encoding_ref(x, ind, max_len=64), 1e-4)
    check(jax.block_until_ready(positional_encoding(x, None)),
          positional_encoding_ref(x, None), 1e-4)

    # 2) Same shapes forced through the Pallas kernels (D=32 packed to 128 lanes).
    check(jax.block_until_ready(positional_encoding(x, ind, force_pallas=True)),
          positional_encoding_ref(x, ind, max_len=64), 1e-4)
    check(jax.block_until_ready(positional_encoding(x, None, force_pallas=True)),
          positional_encoding_ref(x, None), 1e-4)

    # 3) Packed ind path (D=64 -> pack=2), multi-step grid.
    B, S, D = 2, 512, 64
    x = jax.random.normal(ks[2], (B, S, D), jnp.float32)
    ind = jax.random.randint(ks[3], (B, S), 0, 1024, jnp.int32)
    check(jax.block_until_ready(positional_encoding(x, ind, force_pallas=True)),
          positional_encoding_ref(x, ind, max_len=1024), 1e-3)

    # 4) ind=None path, lane-dense D=128, natural (non-forced) dispatch.
    B, S, D = 4, 1024, 128
    x = jax.random.normal(ks[4], (B, S, D), jnp.float32)
    check(jax.block_until_ready(positional_encoding(x, None)),
          positional_encoding_ref(x, None), 1e-3)

    # 5) ind path, already lane-dense D=128, bf16 activations (native-dtype add).
    B, S, D = 2, 256, 128
    xb = jax.random.normal(ks[5], (B, S, D), jnp.float32).astype(jnp.bfloat16)
    indb = jax.random.randint(ks[6], (B, S), 0, 512, jnp.int32)
    check(jax.block_until_ready(positional_encoding(xb, indb, force_pallas=True)),
          positional_encoding_ref(xb, indb, max_len=512), 8e-2)

    # 6) Non-packable case (D=48, S not divisible by the pack factor): the
    #    masked-store fallback inside the kernel still runs correctly.
    B, S, D = 2, 10, 48
    x = jax.random.normal(ks[7], (B, S, D), jnp.float32)
    ind = jax.random.randint(ks[8], (B, S), 0, 100, jnp.int32)
    check(jax.block_until_ready(positional_encoding(x, ind, force_pallas=True)),
          positional_encoding_ref(x, ind, max_len=100), 1e-4)

    print("KERNEL_OK")
</pallas_src>

<mosaic_0001>
module attributes {stable_mosaic.version = 11 : i64} {
  func.func @_pe_kernel_ind(%arg0: i32, %arg1: i32, %arg2: memref<1x1x128xf32, #tpu.memory_space<vmem>>, %arg3: memref<1x1x128xf32, #tpu.memory_space<vmem>>, %arg4: memref<1x1x128xi32, #tpu.memory_space<vmem>>, %arg5: memref<1x2x4xi32, #tpu.memory_space<vmem>>, %arg6: memref<1x2x128xf32, #tpu.memory_space<vmem>>, %arg7: memref<1x2x128xf32, #tpu.memory_space<vmem>>) attributes {dimension_semantics = [#tpu.dimension_semantics<parallel>, #tpu.dimension_semantics<parallel>], iteration_bounds = array<i64: 1, 2>, scalar_prefetch = 0 : i64, scratch_operands = 0 : i64, tpu.core_type = #tpu.core_type<tc>, window_params = [{pipeline_mode = #tpu.pipeline_mode<synchronous>, transform_indices = @transform_0, window_bounds = array<i64: 1, 1, 128>}, {pipeline_mode = #tpu.pipeline_mode<synchronous>, transform_indices = @transform_1, window_bounds = array<i64: 1, 1, 128>}, {pipeline_mode = #tpu.pipeline_mode<synchronous>, transform_indices = @transform_2, window_bounds = array<i64: 1, 1, 128>}, {transform_indices = @transform_3, window_bounds = array<i64: 1, 2, 4>}, {transform_indices = @transform_4, window_bounds = array<i64: 1, 2, 128>}, {transform_indices = @transform_5, window_bounds = array<i64: 1, 2, 128>}]} {
    %c0 = arith.constant 0 : index
    %c0_0 = arith.constant 0 : index
    %c0_1 = arith.constant 0 : index
    %0 = vector.load %arg5[%c0, %c0_0, %c0_1] : memref<1x2x4xi32, #tpu.memory_space<vmem>>, vector<1x2x4xi32>
    %1 = arith.sitofp %0 : vector<1x2x4xi32> to vector<1x2x4xf32>
    %c0_2 = arith.constant 0 : index
    %c0_3 = arith.constant 0 : index
    %c0_4 = arith.constant 0 : index
    %2 = vector.load %arg4[%c0_2, %c0_3, %c0_4] : memref<1x1x128xi32, #tpu.memory_space<vmem>>, vector<1x1x128xi32>
    %3 = vector.extract_strided_slice %1 {offsets = [0, 0, 0], sizes = [1, 2, 1], strides = [1, 1, 1]} : vector<1x2x4xf32> to vector<1x2x1xf32>
    %c1_i32 = arith.constant 1 : i32
    %4 = vector.broadcast %c1_i32 : i32 to vector<1x1x128xi32>
    %5 = arith.cmpi eq, %2, %4 : vector<1x1x128xi32>
    %6 = vector.extract_strided_slice %1 {offsets = [0, 0, 1], sizes = [1, 2, 1], strides = [1, 1, 1]} : vector<1x2x4xf32> to vector<1x2x1xf32>
    %7 = vector.shape_cast %5 : vector<1x1x128xi1> to vector<1x1x128xi1>
    %8 = vector.broadcast %7 : vector<1x1x128xi1> to vector<1x2x128xi1>
    %9 = vector.shape_cast %6 : vector<1x2x1xf32> to vector<1x2x1xf32>
    %10 = vector.broadcast %9 : vector<1x2x1xf32> to vector<1x2x128xf32>
    %11 = vector.shape_cast %3 : vector<1x2x1xf32> to vector<1x2x1xf32>
    %12 = vector.broadcast %11 : vector<1x2x1xf32> to vector<1x2x128xf32>
    %13 = arith.select %8, %10, %12 : vector<1x2x128xi1>, vector<1x2x128xf32>
    %c2_i32 = arith.constant 2 : i32
    %14 = vector.broadcast %c2_i32 : i32 to vector<1x1x128xi32>
    %15 = arith.cmpi eq, %2, %14 : vector<1x1x128xi32>
    %16 = vector.extract_strided_slice %1 {offsets = [0, 0, 2], sizes = [1, 2, 1], strides = [1, 1, 1]} : vector<1x2x4xf32> to vector<1x2x1xf32>
    %17 = vector.shape_cast %15 : vector<1x1x128xi1> to vector<1x1x128xi1>
    %18 = vector.broadcast %17 : vector<1x1x128xi1> to vector<1x2x128xi1>
    %19 = vector.shape_cast %16 : vector<1x2x1xf32> to vector<1x2x1xf32>
    %20 = vector.broadcast %19 : vector<1x2x1xf32> to vector<1x2x128xf32>
    %21 = arith.select %18, %20, %13 : vector<1x2x128xi1>, vector<1x2x128xf32>
    %c3_i32 = arith.constant 3 : i32
    %22 = vector.broadcast %c3_i32 : i32 to vector<1x1x128xi32>
    %23 = arith.cmpi eq, %2, %22 : vector<1x1x128xi32>
    %24 = vector.extract_strided_slice %1 {offsets = [0, 0, 3], sizes = [1, 2, 1], strides = [1, 1, 1]} : vector<1x2x4xf32> to vector<1x2x1xf32>
    %25 = vector.shape_cast %23 : vector<1x1x128xi1> to vector<1x1x128xi1>
    %26 = vector.broadcast %25 : vector<1x1x128xi1> to vector<1x2x128xi1>
    %27 = vector.shape_cast %24 : vector<1x2x1xf32> to vector<1x2x1xf32>
    %28 = vector.broadcast %27 : vector<1x2x1xf32> to vector<1x2x128xf32>
    %29 = arith.select %26, %28, %21 : vector<1x2x128xi1>, vector<1x2x128xf32>
    %c0_5 = arith.constant 0 : index
    %c0_6 = arith.constant 0 : index
    %c0_7 = arith.constant 0 : index
    %30 = vector.load %arg2[%c0_5, %c0_6, %c0_7] : memref<1x1x128xf32, #tpu.memory_space<vmem>>, vector<1x1x128xf32>
    %31 = vector.broadcast %30 : vector<1x1x128xf32> to vector<1x2x128xf32>
    %32 = arith.mulf %29, %31 : vector<1x2x128xf32>
    %c0_8 = arith.constant 0 : index
    %c0_9 = arith.constant 0 : index
    %c0_10 = arith.constant 0 : index
    %33 = vector.load %arg3[%c0_8, %c0_9, %c0_10] : memref<1x1x128xf32, #tpu.memory_space<vmem>>, vector<1x1x128xf32>
    %34 = vector.broadcast %33 : vector<1x1x128xf32> to vector<1x2x128xf32>
    %35 = arith.addf %32, %34 : vector<1x2x128xf32>
    %36 = math.sin %35 : vector<1x2x128xf32>
    %c0_11 = arith.constant 0 : index
    %c0_12 = arith.constant 0 : index
    %c0_13 = arith.constant 0 : index
    %37 = vector.load %arg6[%c0_11, %c0_12, %c0_13] : memref<1x2x128xf32, #tpu.memory_space<vmem>>, vector<1x2x128xf32>
    %38 = arith.addf %37, %36 : vector<1x2x128xf32>
    %c0_14 = arith.constant 0 : index
    %c0_15 = arith.constant 0 : index
    %c0_16 = arith.constant 0 : index
    %39 = vector.load %arg7[%c0_14, %c0_15, %c0_16] : memref<1x2x128xf32, #tpu.memory_space<vmem>>, vector<1x2x128xf32>
    tpu.vector_store %arg7[%c0_14, %c0_15, %c0_16], %38 {strides = array<i32>} : memref<1x2x128xf32, #tpu.memory_space<vmem>>, vector<1x2x128xf32>,
    return
  }
  func.func @transform_0(%arg0: i32, %arg1: i32) -> (i32, i32, i32) {
    %c0_i32 = arith.constant 0 : i32
    %c0_i32_0 = arith.constant 0 : i32
    %c0_i32_1 = arith.constant 0 : i32
    %c0_i32_2 = arith.constant 0 : i32
    return %c0_i32, %c0_i32_0, %c0_i32_1 : i32, i32, i32
  }
  func.func @transform_1(%arg0: i32, %arg1: i32) -> (i32, i32, i32) {
    %c0_i32 = arith.constant 0 : i32
    %c0_i32_0 = arith.constant 0 : i32
    %c0_i32_1 = arith.constant 0 : i32
    %c0_i32_2 = arith.constant 0 : i32
    return %c0_i32, %c0_i32_0, %c0_i32_1 : i32, i32, i32
  }
  func.func @transform_2(%arg0: i32, %arg1: i32) -> (i32, i32, i32) {
    %c0_i32 = arith.constant 0 : i32
    %c0_i32_0 = arith.constant 0 : i32
    %c0_i32_1 = arith.constant 0 : i32
    %c0_i32_2 = arith.constant 0 : i32
    return %c0_i32, %c0_i32_0, %c0_i32_1 : i32, i32, i32
  }
  func.func @transform_3(%arg0: i32, %arg1: i32) -> (i32, i32, i32) {
    %c0_i32 = arith.constant 0 : i32
    %c0_i32_0 = arith.constant 0 : i32
    return %arg1, %arg0, %c0_i32 : i32, i32, i32
  }
  func.func @transform_4(%arg0: i32, %arg1: i32) -> (i32, i32, i32) {
    %c0_i32 = arith.constant 0 : i32
    %c0_i32_0 = arith.constant 0 : i32
    return %arg1, %arg0, %c0_i32 : i32, i32, i32
  }
  func.func @transform_5(%arg0: i32, %arg1: i32) -> (i32, i32, i32) {
    %c0_i32 = arith.constant 0 : i32
    %c0_i32_0 = arith.constant 0 : i32
    return %arg1, %arg0, %c0_i32 : i32, i32, i32
  }
}

</mosaic_0001>

<bundles_post_ra>
// kernel: tpu_custom_call.1
= control target key start
LH: loop header
LB: loop body
LE: loop exit
PB: predicated region body
PF: predicated region fallthrough
CT: control target
= control target key end

     0   :  { %s1293_s0 = inlined_call_operand.hbm [shape: f32[1,1,128], index: 0, kind: input, shape index: {}]   ;;  %s1294_s1 = inlined_call_operand.hbm [shape: f32[1,1,128], index: 1, kind: input, shape index: {}]   ;;  %s1295_s2 = inlined_call_operand.vmem [shape: s32[1,1,128], index: 2, kind: input, shape index: {}]   ;;  %s1296_s3 = inlined_call_operand.hbm [shape: s32[2,2,4], index: 3, kind: input, shape index: {}]   ;;  %s1297_s4 = inlined_call_operand.hbm [shape: f32[2,2,128], index: 4, kind: input, shape index: {}]   ;;  %s1298_s5 = inlined_call_operand.hbm [shape: f32[2,2,128], index: 5, kind: output, shape index: {}]  }
   0x1   :  { %1303 = sst [smem:[#allocation19_spill]] %s1293_s0 }
   0x2   :  { %1304 = sst [smem:[#allocation20_spill]] %s1296_s3 }
   0x3   :  { %10 = vsyncpa [#allocation3], 0 }
   0x4   :  { %11 = vsyncpa [#allocation6], 0 }
   0x5   :  { %12 = vsyncpa [#allocation4], 0 }
   0x6   :  { %14 = vsyncpa [#allocation4 + $0x1], 0  ;;  %s1047_s18 = smov 0   ;;  %s1049_s19 = smov 0  }
   0x7   :  { %s1051_s20 = smov 0   ;;  %s1053_s21 = smov 0  }
   0x8   :  { %s1055_s22 = smov 0   ;;  %s1057_s23 = smov 0  }
   0x9 LB: > { %1305 = sst [smem:[#allocation14_spill]] %s991_s20  ;;  %s1078_s24 = sadd.s32 4294967295, %s1003_s23   ;;  %s1003_s23 = sphi %s1057_s23, %s20_s23   ;;  %s999_s22 = sphi %s1055_s22, %s1323_s22   ;;  %s995_s21 = sphi %s1053_s21, %s1322_s21   ;;  %s991_s20 = sphi %s1051_s20, %s1321_s20   ;;  %s987_s19 = sphi %s1049_s19, %s1325_s19   ;;  %s983_s18 = sphi %s1047_s18, %s1324_s18  }
   0xa   : > { %1306 = sst [smem:[#allocation15_spill]] %s999_s22  ;;  %s666_s25 = sadd.s32 4294967294, %s1003_s23  }
   0xb   : > { %p117_p0 = scmp.ne.s32.totalorder %s987_s19, %s983_s18  ;;  %p118_p1 = scmp.eq.s32.totalorder %s1078_s24, 0 }
   0xc   : > { %p171_p2 = scmp.eq.s32.totalorder %s1078_s24, 1  ;;  %p177_p3 = scmp.eq.s32.totalorder %s666_s25, 1 }
   0xd   : > { %p1087_p4 = por %p118_p1, %p117_p0  ;;  %p667_p5 = scmp.ge.s32.totalorder %s1003_s23, 1 }
   0xe   : > { %p1092_p6 = por %p177_p3, %p117_p0  ;;  %p184_p7 = scmp.lt.s32.totalorder %s1003_s23, 3 }
   0xf   : > { %s1310_s0 = sld [smem:[#allocation19_spill]]  ;;  %p670_p9 = scmp.ge.s32.totalorder %s1003_s23, 2 }
  0x10   : > { %s1308_s27 = scalar_select %p1092_p6, 1, 0 }
  0x11   : > { %p1100_p8 = pnand %p667_p5, %p184_p7  ;;  %s1005_s7 = smov [#allocation2]  }
  0x12   : > { %1309 = sst [smem:[#allocation16_spill]] %s1308_s27  ;;  %s198_s8 = sshll.u32 %s1005_s7, 4  ;;  %s199_s8 = int_to_ptr.vmem [resolvable:$true] %s198_s8 }
  0x13   : > { %p702_p10 = pneg %p1100_p8  ;;  %s29_s10 = sadd.s32 1, %s999_s22 }
  0x14   : > { %p30_p12 = scmp.ge.s32.totalorder %s29_s10, 2  ;;  %s104_s11 = sadd.s32 1, %s991_s20 }
  0x15   : > { %s196_s30 = sshll.u32 %s1310_s0, 4  ;;  %p1109_p11 = pnand %p702_p10, %p118_p1  ;;  %s197_s30 = int_to_ptr.hbm [resolvable:$true] %s196_s30 }
  0x16   : > { %p111_p13 = scmp.ne.s32.totalorder %s991_s20, %s987_s19  ;;  %p112_p0 = scmp.eq.s32.totalorder %s1003_s23, 0 }
  0x17   : > { %705 = dma.hbm_to_vmem [thread:$0]  (!%p1109_p11), %s197_s30, 16, %s199_s8, [#allocation3]  }
  0x18   : > { %s1327_s10 = smov (%p30_p12, %s29_s10), 0  ;;  %p1122_p3 = por %p112_p0, %p111_p13 }
  0x19   : > { %1313 = sst [smem:[#allocation17_spill]] %s1327_s10  ;;  %p1128_p5 = por %p171_p2, %p111_p13 }
  0x1a   : > { %s99_s14 = ssub.s32 %s999_s22, %s1327_s10  ;;  %p722_p7 = scmp.lt.s32.totalorder %s1003_s23, 2 }
  0x1b   : > { %p102_p10 = scmp.eq.s32.totalorder %s99_s14, 0  ;;  %s224_s15 = sand.u32 1, %s1003_s23  }
  0x1c   : > { %s226_s16 = sand.u32 1, %s991_s20   ;;  %s672_s28 = sshll.u32 %s999_s22, 1 }
  0x1d   : > { %s1138_s17 = scalar_select %p102_p10, %s991_s20, %s104_s11  }
  0x1e   : > { %s671_s25 = sshll.u32 %s226_s16, 1  ;;  %s1317_s3 = sld [smem:[#allocation20_spill]] }
  0x1f   : > { %1316 = sst [smem:[#allocation18_spill]] %s1138_s17  ;;  %s228_s0 = scalar_lea.vmem [#allocation7], %s671_s25 }
  0x20   : > { %s237_s27 = sshll.u32 %s228_s0, 4  ;;  %p1148_p2 = pnand %p722_p7, %p1122_p3  ;;  %s238_s27 = int_to_ptr.vmem [resolvable:$true] %s237_s27 }
  0x21   : > { %s208_s16 = sshll.u32 %s1294_s1, 4  ;;  %s1006_s29 = smov [#allocation5]   ;;  %s209_s16 = int_to_ptr.hbm [resolvable:$true] %s208_s16 }
  0x22   : > { %s210_s30 = sshll.u32 %s1006_s29, 4  ;;  %s248_s22 = scalar_lea.vmem [#allocation8], %s671_s25  ;;  %s211_s30 = int_to_ptr.vmem [resolvable:$true] %s210_s30 }
  0x23   : > { %708 = dma.hbm_to_vmem [thread:$0]  (!%p1109_p11), %s209_s16, 16, %s211_s30, [#allocation6]  }
  0x24   : > { %s233_s7 = scalar_lea.hbm %s1317_s3, %s672_s28  ;;  %s253_s3 = scalar_lea.hbm %s1297_s4, %s672_s28 }
  0x25   : > { %s235_s8 = sshll.u32 %s233_s7, 4  ;;  %s225_s7 = scalar_lea.sflag [#allocation3], %s224_s15  ;;  %s236_s8 = int_to_ptr.hbm [resolvable:$true] %s235_s8 }
  0x26   : > { %712 = dma.hbm_to_vmem [thread:$0]  (!%p1148_p2), %s236_s8, 32, %s238_s27, %s225_s7  }
  0x27   : > { %s257_s17 = sshll.u32 %s248_s22, 4  ;;  %s255_s20 = sshll.u32 %s253_s3, 4  ;;  %s258_s17 = int_to_ptr.vmem [resolvable:$true] %s257_s17  ;;  %s256_s20 = int_to_ptr.hbm [resolvable:$true] %s255_s20 }
  0x28   : > { %715 = dma.hbm_to_vmem [thread:$0]  (!%p1148_p2), %s256_s20, 32, %s258_s17, %s225_s7  }
  0x29   : > { %266 = sbr.rel (%p1100_p8) target bundleno = 288 (0x120), region = 40 }
  0x2e   : > { %966 = dma.done.wait (%p118_p1), [#allocation3], 16  }
  0x2f   : > { %968 = vsyncadd (%p118_p1), [#allocation3], 4294967280 }
  0x30   : > { %970 = dma.done.wait (%p118_p1), [#allocation6], 16  }
  0x31   : > { %972 = vsyncadd (%p118_p1), [#allocation6], 4294967280  ;;  %s278_s3 = sand.u32 1, %s1078_s24   ;;  %s280_s20 = sand.u32 1, %s987_s19  }
  0x32   : > { %s1178_s22 = sshll.u32 %s280_s20, 1  ;;  %s279_s27 = scalar_lea.sflag [#allocation3], %s278_s3 }
  0x33   : > { %s282_s6 = scalar_lea.vmem [#allocation7], %s1178_s22 }
  0x34   : > { %974 = dma.done.wait (%p1087_p4), %s279_s27, 64  }
  0x35   : > { %976 = vsyncadd (%p1087_p4), %s279_s27, 4294967232  ;;  %v1007_v0 = vmov 1   ;;  %v1008_v1 = vmov 2   ;;  %v325_v2 = vld [vmem:[%s282_s6] sm:$0x3]  ;;  %v1009_v4 = vmov 0  }
  0x36   : > { %786 = vset.pattern.permute.xlu0 %v1007_v0  ;;  %788 = vset.pattern.permute.xlu1 %v1008_v1  ;;  %v326_v3 = vcvt.s32.f32 %v325_v2  ;;  %v1010_v5 = vmov 3   ;;  %v327_v6 = vld [vmem:[%s1295_s2] sm:$0x1]  ;;  %v792_v19 = vld [vmem:[#allocation5] ss:$0 sm:$0xff]  ;;  %s685_s26 = sshll.u32 %s995_s21, 1 }
  0x37   : > { %vm328_vm0 = vcmp.eq.s32.totalorder %v327_v6, 1  ;;  %vm342_vm1 = vcmp.eq.s32.totalorder %v327_v6, 2  ;;  %vm351_vm2 = vcmp.eq.s32.totalorder %v327_v6, 3  ;;  %v791_v16 = vld [vmem:[#allocation2] ss:$0 sm:$0xff]  ;;  %s540_s17 = scalar_lea.hbm %s1298_s5, %s685_s26  ;;  %s292_s25 = scalar_lea.vmem [#allocation8], %s1178_s22 }
  0x38   : > { %334 = vperm.xlu0 %786, %v326_v3   ;;  %347 = vperm.xlu1 %788, %v326_v3   ;;  %v329_v9 = vsel %vm328_vm0, 1, %v1009_v4  ;;  %v343_v10 = vsel %vm342_vm1, 1, %v1009_v4  ;;  %v352_v11 = vsel %vm351_vm2, 1, %v1009_v4  ;;  %v1011_v35 = vmov 683565275   ;;  %s324_s28 = scalar_lea.vmem [#allocation9], %s1178_s22 }
  0x39   : > { %v330_v12 = vperm.slane %v329_v9, 0  ;;  %v344_v13 = vperm.slane %v343_v10, 0  ;;  %v353_v14 = vperm.slane %v352_v11, 0  ;;  %v1012_v37 = vmov 2475754826   ;;  %s542_s8 = sshll.u32 %s324_s28, 4  ;;  %s543_s8 = int_to_ptr.vmem [resolvable:$true] %s542_s8 }
  0x3a   : > { %v1013_v40 = vmov 2131351028   ;;  %v1014_v43 = vmov 2102212464   ;;  %v1015_v46 = vmov 920167782  }
  0x3b   : > { %vm331_vm3 = vcmp.eq.s32.totalorder %v330_v12, 1  ;;  %vm345_vm4 = vcmp.eq.s32.totalorder %v344_v13, 1  ;;  %vm354_vm5 = vcmp.eq.s32.totalorder %v353_v14, 1  ;;  %v1016_v49 = vmov 1326507024   ;;  %s544_s21 = sshll.u32 %s540_s17, 4  ;;  %s545_s21 = int_to_ptr.hbm [resolvable:$true] %s544_s21 }
  0x3c   : > { %s529_s14 = scalar_lea.sflag [#allocation4], %s280_s20  ;;  %s927_s11 = sshra.s32 %s545_s21, 4  ;;  %s928_s11 = int_to_ptr.hbm [resolvable:$true] %s927_s11 }
  0x3d   : > { %s929_s16 = scalar_lea.hbm %s928_s11, 2  ;;  %s933_s7 = scalar_lea.hbm %s1298_s5, 4 }
  0x3e   : > { %p930_p1 = scmp.ne.s32.totalorder %s928_s11, %s929_s16  ;;  %p934_p11 = scmp.lt.s32.totalorder %s928_s11, %s1298_s5 }
  0x3f   : > { %p935_p12 = scmp.lt.s32.totalorder %s933_s7, %s929_s16 }
  0x40   : > { %787 = vset.pattern.permute.xlu0 %v1009_v4  ;;  %789 = vset.pattern.permute.xlu1 %v1010_v5  ;;  %p931_p4 = pnand %p930_p1, %p1128_p5 }
  0x41   : > { %338 = vperm.xlu0 %787, %v326_v3   ;;  %356 = vperm.xlu1 %789, %v326_v3   ;;  %p936_p13 = por %p935_p12, %p934_p11 }
  0x42   : > { %p932_p8 = pneg %p931_p4 }
  0x44   : > { %p937_p0 = pnand %p936_p13, %p932_p8 }
  0x49   : > { %790 = vset.pattern.permute.xlu0 %v1010_v5 }
  0xaa   : > { %v335_v7 = vpop.permute.xlu0 %334  ;;  %v348_v8 = vpop.permute.xlu1 %347 }
  0xb3   : > { %v339_v15 = vpop.permute.xlu0 %338  ;;  %v357_v17 = vpop.permute.xlu1 %356 }
  0xb4   : > { %v341_v18 = vsel %vm331_vm3, %v335_v7, %v339_v15 }
  0xb5   : > { %v350_v20 = vsel %vm345_vm4, %v348_v8, %v341_v18 }
  0xb6   : > { %v359_v21 = vsel %vm354_vm5, %v357_v17, %v350_v20 }
  0xb7   : > { %v364_v22 = vmul.f32 %v791_v16, %v359_v21 }
  0xb9   : > { %v1192_v23 = vadd.f32 %v792_v19, %v364_v22 }
  0xbb   : > { %v373_v24 = vand.u32 2139095040, %v1192_v23  ;;  %v370_v27 = vand.u32 2147483647, %v1192_v23  ;;  %vm372_vm2 = vcmp.lt.s32.totalorder %v1192_v23, 0 }
  0xbd   : > { %v374_v25 = vshrl.u32 %v373_v24, 23  ;;  %v377_v29 = vand.u32 8388607, %v370_v27  ;;  %vm371_vm3 = vcmp.le.f32.partialorder %v370_v27, 0.7853982 }
  0xbf   : > { %v681_v26 = vadd.s32 4294967169, %v374_v25  ;;  %v378_v33 = vor.u32 8388608, %v377_v29 }
  0xc1   : > { %v380_v28 = vadd.s32 1, %v681_v26  ;;  %v1209_v56 = vshll.u32 %v378_v33, 8 }
  0xc3   : > { %vm381_vm6 = vcmp.gt.s32.totalorder %v380_v28, 0  ;;  %v419_v1 = vand.u32 65535, %v1209_v56  ;;  %v420_v2 = vshrl.u32 %v1209_v56, 16 }
  0xc4   : > { %v382_v30 = vsel %vm381_vm6, %v380_v28, 0 }
  0xc5   : > { %v384_v31 = vand.u32 31, %v382_v30  ;;  %v1200_v34 = vshrl.u32 %v382_v30, 5 }
  0xc7   : > { %v1198_v32 = vsub.s32 32, %v384_v31  ;;  %v387_v36 = vshll.u32 %v1011_v35, %v384_v31  ;;  %v390_v38 = vshll.u32 %v1012_v37, %v384_v31  ;;  %v393_v42 = vshll.u32 %v1013_v40, %v384_v31 }
  0xc8   : > { %v396_v45 = vshll.u32 %v1014_v43, %v384_v31  ;;  %v399_v48 = vshll.u32 %v1015_v46, %v384_v31  ;;  %vm402_vm7 = vcmp.lt.s32.totalorder %v1200_v34, 1  ;;  %vm405_vm8 = vcmp.lt.s32.totalorder %v1200_v34, 4 }
  0xc9   : > { %v388_v39 = vshrl.u32 %v1012_v37, %v1198_v32  ;;  %v391_v41 = vshrl.u32 %v1013_v40, %v1198_v32  ;;  %v394_v44 = vshrl.u32 %v1014_v43, %v1198_v32  ;;  %v397_v47 = vshrl.u32 %v1015_v46, %v1198_v32 }
  0xca   : > { %v400_v50 = vshrl.u32 %v1016_v49, %v1198_v32  ;;  %vm404_vm9 = vcmp.lt.s32.totalorder %v1200_v34, 3  ;;  %vm403_vm10 = vcmp.lt.s32.totalorder %v1200_v34, 2  ;;  %v386_v30 = vshrl.u32 %v1011_v35, %v1198_v32 }
  0xcb   : > { %v389_v51 = vor.u32 %v388_v39, %v387_v36  ;;  %v392_v52 = vor.u32 %v391_v41, %v390_v38  ;;  %v395_v53 = vor.u32 %v394_v44, %v393_v42  ;;  %v398_v54 = vor.u32 %v397_v47, %v396_v45 }
  0xcc   : > { %v401_v55 = vor.u32 %v400_v50, %v399_v48 }
  0xcd   : > { %v410_v57 = vsel %vm402_vm7, %v389_v51, %v392_v52  ;;  %v414_v58 = vsel %vm402_vm7, %v392_v52, %v395_v53  ;;  %v411_v59 = vsel %vm405_vm8, %v398_v54, 920167782  ;;  %v407_v26 = vsel %vm405_vm8, %v395_v53, 2102212464 }
  0xce   : > { %v415_v60 = vsel %vm405_vm8, %v401_v55, 1326507024  ;;  %v412_v61 = vsel %vm404_vm9, %v395_v53, %v411_v59  ;;  %v406_v39 = vsel %vm402_vm7, %v386_v30, %v389_v51  ;;  %v408_v40 = vsel %vm404_vm9, %v392_v52, %v407_v26 }
  0xcf   : > { %v416_v62 = vsel %vm404_vm9, %v398_v54, %v415_v60  ;;  %v413_v63 = vsel %vm403_vm10, %v410_v57, %v412_v61  ;;  %v409_v32 = vsel %vm403_vm10, %v406_v39, %v408_v40  ;;  %vm513_vm7 = vweird.f32 %v1192_v23 }
  0xd0   : > { %v417_v0 = vsel %vm403_vm10, %v414_v58, %v416_v62  ;;  %v443_v6 = vand.u32 65535, %v413_v63  ;;  %v444_v7 = vshrl.u32 %v413_v63, 16  ;;  %v463_v47 = vmul.u32 %v1209_v56, %v409_v32 }
  0xd1   : > { %v421_v3 = vand.u32 65535, %v417_v0  ;;  %v422_v5 = vshrl.u32 %v417_v0, 16 }
  0xd2   : > { %v446_v10 = vmul.u32 %v444_v7, %v419_v1  ;;  %v447_v11 = vmul.u32 %v443_v6, %v420_v2  ;;  %v445_v15 = vmul.u32 %v443_v6, %v419_v1  ;;  %v448_v19 = vmul.u32 %v444_v7, %v420_v2 }
  0xd3   : > { %v424_v8 = vmul.u32 %v422_v5, %v419_v1  ;;  %v425_v9 = vmul.u32 %v421_v3, %v420_v2  ;;  %v423_v12 = vmul.u32 %v421_v3, %v419_v1  ;;  %v426_v14 = vmul.u32 %v422_v5, %v420_v2 }
  0xd4   : > { %v449_v16 = vshll.u32 %v446_v10, 16  ;;  %v451_v21 = vshll.u32 %v447_v11, 16  ;;  %v450_v37 = vshrl.u32 %v446_v10, 16  ;;  %v452_v43 = vshrl.u32 %v447_v11, 16 }
  0xd5   : > { %v427_v13 = vshll.u32 %v424_v8, 16  ;;  %v429_v17 = vshll.u32 %v425_v9, 16  ;;  %v428_v31 = vshrl.u32 %v424_v8, 16  ;;  %v430_v41 = vshrl.u32 %v425_v9, 16 }
  0xd6   : > { %vm453_vm12 = vc.u32 %v445_v15, %v449_v16  ;;  %v455_v22 = vadd.s32 %v449_v16, %v445_v15 }
  0xd7   : > { %vm431_vm11 = vc.u32 %v423_v12, %v427_v13  ;;  %v433_v18 = vadd.s32 %v427_v13, %v423_v12  ;;  %v454_v25 = vsel %vm453_vm12, 1, %v1009_v4 }
  0xd8   : > { %v432_v20 = vsel %vm431_vm11, 1, %v1009_v4  ;;  %v456_v29 = vadd.s32 %v454_v25, %v448_v19  ;;  %vm457_vm14 = vc.u32 %v455_v22, %v451_v21  ;;  %v459_v46 = vadd.s32 %v455_v22, %v451_v21 }
  0xd9   : > { %v434_v24 = vadd.s32 %v432_v20, %v426_v14  ;;  %vm435_vm13 = vc.u32 %v433_v18, %v429_v17  ;;  %v458_v36 = vsel %vm457_vm14, 1, %v1009_v4 }
  0xda   : > { %v436_v28 = vsel %vm435_vm13, 1, %v1009_v4  ;;  %v460_v38 = vadd.s32 %v458_v36, %v456_v29 }
  0xdb   : > { %v438_v33 = vadd.s32 %v436_v28, %v434_v24 }
  0xdc   : > { %v461_v44 = vadd.s32 %v460_v38, %v450_v37  ;;  %v525_v37 = vld [vmem:[%s292_s25] sm:$0x3] }
  0xdd   : > { %v439_v42 = vadd.s32 %v438_v33, %v428_v31 }
  0xde   : > { %v462_v35 = vadd.s32 %v461_v44, %v452_v43 }
  0xdf   : > { %v440_v45 = vadd.s32 %v439_v42, %v430_v41 }
  0xe0   : > { %v466_v4 = vadd.s32 1, %v462_v35 }
  0xe1   : > { %vm465_vm15 = vc.u32 %v440_v45, %v459_v46  ;;  %v464_v34 = vadd.s32 %v459_v46, %v440_v45 }
  0xe2   : > { %v467_v48 = vsel %vm465_vm15, %v466_v4, %v462_v35 }
  0xe3   : > { %v468_v49 = vadd.s32 %v467_v48, %v463_v47 }
  0xe5   : > { %v469_v50 = vadd.s32 536870912, %v468_v49 }
  0xe7   : > { %v470_v51 = vshrl.u32 %v469_v50, 30 }
  0xe9   : > { %v471_v53 = vshll.u32 %v470_v51, 30  ;;  %v494_v9 = vsub.s32 4, %v470_v51 }
  0xeb   : > { %v472_v52 = vsub.s32 %v468_v49, %v471_v53  ;;  %v495_v14 = vsel %vm372_vm2, %v494_v9, %v470_v51 }
  0xec   : > { %v497_v18 = vsel %vm371_vm3, 0, %v495_v14 }
  0xed   : > { %vm473_vm0 = vcmp.lt.s32.totalorder %v472_v52, 0  ;;  %v474_v54 = vsub.s32 0, %v472_v52  ;;  %v514_v22 = vadd.s32 3, %v497_v18 }
  0xef   : > { %v475_v55 = vsel %vm473_vm0, %v474_v54, %v472_v52  ;;  %v515_v28 = vand.u32 3, %v514_v22 }
  0xf0   : > { %v476_v57 = vclz %v475_v55 }
  0xf1   : > { %vm517_vm4 = vcmp.eq.s32.totalorder %v515_v28, 0  ;;  %vm520_vm5 = vcmp.eq.s32.totalorder %v515_v28, 2  ;;  %vm516_vm6 = vcmp.lt.s32.totalorder %v515_v28, 2 }
  0xf2   : > { %v682_v58 = vadd.s32 4294967294, %v476_v57 }
  0xf4   : > { %vm683_vm1 = vcmp.lt.s32.totalorder %v682_v58, 0 }
  0xf5   : > { %v479_v59 = vsel %vm683_vm1, 0, %v682_v58 }
  0xf6   : > { %v480_v60 = vsub.s32 32, %v479_v59  ;;  %v484_v61 = vsub.s32 4294967266, %v479_v59  ;;  %v481_v62 = vshll.u32 %v472_v52, %v479_v59 }
  0xf8   : > { %v482_v63 = vshrl.u32 %v464_v34, %v480_v60  ;;  %v485_v0 = vadd.s32 127, %v484_v61 }
  0xfa   : > { %v483_v56 = vor.u32 %v482_v63, %v481_v62  ;;  %v486_v1 = vshll.u32 %v485_v0, 23 }
  0xfc   : > { %v487_v2 = vor.u32 4788187, %v486_v1  ;;  %v490_v5 = vcvt.s32.f32 %v483_v56 }
  0xfe   : > { %v488_v3 = vand.u32 2147483647, %v487_v2 }
 0x100   : > { %v491_v6 = vmul.f32 %v490_v5, %v488_v3 }
 0x102   : > { %v492_v7 = vxor.u32 2147483648, %v491_v6 }
 0x104   : > { %v493_v8 = vsel %vm372_vm2, %v492_v7, %v491_v6 }
 0x105   : > { %v496_v10 = vsel %vm371_vm3, %v1192_v23, %v493_v8 }
 0x106   : > { %v498_v11 = vmul.f32 %v496_v10, %v496_v10 }
 0x108   : > { %v506_v12 = vmul.f32 -0.00019511016, %v498_v11  ;;  %v499_v13 = vmul.f32 -0.001358992, %v498_v11 }
 0x10a   : > { %v507_v15 = vadd.f32 0.008332121, %v506_v12  ;;  %v500_v16 = vadd.f32 0.041655596, %v499_v13 }
 0x10c   : > { %v508_v17 = vmul.f32 %v507_v15, %v498_v11  ;;  %v501_v19 = vmul.f32 %v500_v16, %v498_v11 }
 0x10e   : > { %v509_v20 = vadd.f32 -0.16666654, %v508_v17  ;;  %v502_v21 = vadd.f32 -0.4999988, %v501_v19 }
 0x110   : > { %v510_v24 = vmul.f32 %v509_v20, %v498_v11  ;;  %v503_v27 = vmul.f32 %v502_v21, %v498_v11 }
 0x112   : > { %v511_v25 = vadd.f32 1.0, %v510_v24  ;;  %v504_v26 = vadd.f32 1.0, %v503_v27 }
 0x114   : > { %v512_v29 = vmul.f32 %v511_v25, %v496_v10  ;;  %v521_v30 = vxor.u32 2147483648, %v504_v26 }
 0x116   : > { %v518_v31 = vxor.u32 2147483648, %v512_v29  ;;  %v522_v36 = vsel %vm520_vm5, %v521_v30, %v512_v29 }
 0x118   : > { %v519_v33 = vsel %vm517_vm4, %v504_v26, %v518_v31 }
 0x119   : > { %v523_v38 = vsel %vm516_vm6, %v519_v33, %v522_v36 }
 0x11a   : > { %v524_v39 = vsel %vm513_vm7, nan, %v523_v38 }
 0x11b   : > { %v526_v40 = vadd.f32 %v525_v37, %v524_v39 }
 0x11d   : > { %527 = vst [vmem:[%s324_s28] sm:$0x3] %v526_v40 }
 0x11e   : > { %940 = shalt.err (!%p937_p0)
}
 0x11f   : > { %700 = dma.vmem_to_hbm [thread:$0]  (%p1128_p5), %s543_s8, 32, %s545_s21, %s529_s14  }
 0x120 PF: > { %s556_s20 = sand.u32 1, %s983_s18   ;;  %p717_p3 = pnand %p670_p9, %p1092_p6 }
 0x121   : > { %s557_s22 = scalar_lea.sflag [#allocation4], %s556_s20 }
 0x122   : > { %p718_p7 = pneg %p717_p3 }
 0x124   : > { %978 = dma.done.wait (%p718_p7), %s557_s22, 32  }
 0x125   : > { %980 = vsyncadd (%p718_p7), %s557_s22, 4294967264  ;;  %s20_s23 = sadd.s32 1, %s1003_s23   ;;  %s1320_s27 = sld [smem:[#allocation14_spill]] }
 0x126   : > { %p17_p10 = scmp.ge.s32.totalorder %s20_s23, 4   ;;  %s1321_s20 = sld [smem:[#allocation18_spill]] }
 0x127   : > { %s1322_s21 = sld [smem:[#allocation15_spill]]  ;;  %s1324_s18 = smov %s987_s19 }
 0x128   : > { %s1323_s22 = sld [smem:[#allocation17_spill]]  ;;  %19 = sbr.rel (!%p17_p10) target bundleno = 9 (0x9), region = 103 }
 0x12b   : > { %s1325_s19 = smov %s1320_s27 }
 0x12d   :  { %563 = vsyncpa [#allocation3], 1 }
 0x12e   :  { %565 = vsyncpa [#allocation3 + $0x1], 1 }
 0x12f   :  { %566 = vsyncpa [#allocation6], 1 }
 0x130   :  { %567 = vsyncpa [#allocation4], 1 }
 0x131   :  { %569 = vsyncpa [#allocation4 + $0x1], 1 }

</bundles_post_ra>
